<compile_context>
chip_gen: v6e
topology: v6e:2x2x1
jax: 0.10.0
libtpu: 0.0.40
codegen_flags: <defaults>
</compile_context>

<pallas_src>
import jax
import jax.numpy as jnp
from jax.experimental import pallas as pl
from jax.experimental.pallas import tpu as pltpu


def _feature_selection_kernel(g1_ref, g2_ref, emb_ref, out1_ref, out2_ref):
    """One batch tile: broadcast-multiply the (1, F) gates against (TB, F) emb."""
    emb = emb_ref[...]                      # (TB, F), in flat_emb's dtype
    out1_ref[...] = emb * g1_ref[...]       # (TB, F) * (1, F) broadcast
    out2_ref[...] = emb * g2_ref[...]


def _round_up(x, m):
    return ((x + m - 1) // m) * m


def feature_selection_forward(flat_emb,
                              ctx1, w11, b11, w12, b12,
                              ctx2, w21, b21, w22, b22,
                              *, block_b=8192):
    """Fused FeatureSelection forward. Returns (feature1, feature2)."""
    B, F = flat_emb.shape
    itemsize = jnp.dtype(flat_emb.dtype).itemsize

    # ---- Gate MLPs: batch-invariant (ctx is a (1, E) learned bias), so compute
    # them ONCE here in plain jnp instead of re-computing every grid step.
    def gate(ctx, w1, b1, w2, b2):
        h = jnp.maximum(jnp.dot(ctx, w1, preferred_element_type=jnp.float32) + b1, 0.0)
        logits = jnp.dot(h, w2, preferred_element_type=jnp.float32) + b2
        return jax.nn.sigmoid(logits) * 2.0                       # (1, F), f32

    g1 = gate(ctx1, w11, b11, w12, b12).astype(flat_emb.dtype)     # (1, F)
    g2 = gate(ctx2, w21, b21, w22, b22).astype(flat_emb.dtype)     # (1, F)

    # ---- Batch tiling.
    tb = min(B, block_b)
    # If the whole batch fits in one tile but is big enough to split, use two
    # balanced steps so both v7x TensorCores get work on the "parallel" axis.
    if 2048 < B <= block_b:
        tb = _round_up(pl.cdiv(B, 2), 8)
    grid = (pl.cdiv(B, tb),)

    # VMEM budget: 3 (TB, F) tiles, double-buffered, + negligible gate rows.
    tile_bytes = tb * F * itemsize
    vmem_limit = max(int(6 * tile_bytes * 1.25) + (1 << 20), 16 << 20)

    cost = pl.CostEstimate(
        flops=2 * B * F,
        transcendentals=0,
        bytes_accessed=3 * B * F * itemsize + 2 * F * itemsize,
    )

    const = lambda i: (0, 0)     # gate rows: resident across the whole grid
    batched = lambda i: (i, 0)   # batch-tiled arrays

    out1, out2 = pl.pallas_call(
        _feature_selection_kernel,
        out_shape=(jax.ShapeDtypeStruct((B, F), flat_emb.dtype),
                   jax.ShapeDtypeStruct((B, F), flat_emb.dtype)),
        grid=grid,
        in_specs=[
            pl.BlockSpec((1, F), const),      # gate1 row
            pl.BlockSpec((1, F), const),      # gate2 row
            pl.BlockSpec((tb, F), batched),   # flat_emb (read once, shared)
        ],
        out_specs=(pl.BlockSpec((tb, F), batched),
                   pl.BlockSpec((tb, F), batched)),
        compiler_params=pltpu.CompilerParams(
            dimension_semantics=("parallel",),   # shard batch across TCs on v7x
            vmem_limit_bytes=vmem_limit),
        cost_estimate=cost,
    )(g1, g2, flat_emb)
    return out1, out2


class FeatureSelectionPallas:
    """JAX/Pallas port of FinalMLP.FeatureSelection (empty fs1/fs2 context).

    # TODO(synk): non-empty fs1_context/fs2_context (FeatureEmbedding lookup of X)
    # is not implemented; only the default learned-bias context path is ported.
    """

    def __init__(self, feature_dim, embedding_dim, fs_hidden_units, key):
        E, F = embedding_dim, feature_dim
        (H,) = fs_hidden_units
        ks = jax.random.split(key, 8)

        def linear(kw, kb, fan_in, fan_out):
            bound = 1.0 / jnp.sqrt(fan_in)
            w = jax.random.uniform(kw, (fan_in, fan_out), jnp.float32, -bound, bound)
            b = jax.random.uniform(kb, (1, fan_out), jnp.float32, -bound, bound)
            return w, b

        # fs{1,2}_ctx_bias: nn.Parameter(torch.zeros(1, embedding_dim))
        self.fs1_ctx_bias = jnp.zeros((1, E), jnp.float32)
        self.fs2_ctx_bias = jnp.zeros((1, E), jnp.float32)
        # fs{1,2}_gate MLP: Linear(E,H) -> ReLU -> Linear(H,F) -> Sigmoid
        self.fs1_w1, self.fs1_b1 = linear(ks[0], ks[1], E, H)
        self.fs1_w2, self.fs1_b2 = linear(ks[2], ks[3], H, F)
        self.fs2_w1, self.fs2_b1 = linear(ks[4], ks[5], E, H)
        self.fs2_w2, self.fs2_b2 = linear(ks[6], ks[7], H, F)

    def __call__(self, X, flat_emb):
        # X is unused when fs1_context / fs2_context are empty (default config).
        del X
        return feature_selection_forward(
            flat_emb,
            self.fs1_ctx_bias, self.fs1_w1, self.fs1_b1, self.fs1_w2, self.fs1_b2,
            self.fs2_ctx_bias, self.fs2_w1, self.fs2_b1, self.fs2_w2, self.fs2_b2,
        )

    # pure-JAX reference for correctness checking
    def reference(self, X, flat_emb):
        del X
        B = flat_emb.shape[0]

        def branch(ctx_bias, w1, b1, w2, b2):
            ctx = jnp.broadcast_to(ctx_bias, (B, ctx_bias.shape[1]))
            h = jnp.maximum(ctx @ w1 + b1, 0.0)
            gate = jax.nn.sigmoid(h @ w2 + b2) * 2.0
            return flat_emb * gate

        f1 = branch(self.fs1_ctx_bias, self.fs1_w1, self.fs1_b1, self.fs1_w2, self.fs1_b2)
        f2 = branch(self.fs2_ctx_bias, self.fs2_w1, self.fs2_b1, self.fs2_w2, self.fs2_b2)
        return f1, f2


if __name__ == "__main__":
    # Small shapes consistent with the module:
    #   batch B=8, embedding_dim E=32, 4 fields -> feature_dim F=128, hidden=[64]
    B, E, F, H = 8, 32, 128, 64
    key = jax.random.PRNGKey(0)
    k_param, k_emb, k_x = jax.random.split(key, 3)

    model = FeatureSelectionPallas(feature_dim=F, embedding_dim=E,
                                   fs_hidden_units=[H], key=k_param)

    flat_emb = jax.random.normal(k_emb, (B, F), jnp.float32)
    X = jax.random.normal(k_x, (B, 4), jnp.float32)  # unused (empty context config)

    feat1, feat2 = model(X, flat_emb)
    feat1, feat2 = jax.block_until_ready(feat1), jax.block_until_ready(feat2)

    ref1, ref2 = model.reference(X, flat_emb)
    assert feat1.shape == (B, F) and feat2.shape == (B, F)
    assert jnp.allclose(feat1, ref1, atol=1e-5, rtol=1e-5)
    assert jnp.allclose(feat2, ref2, atol=1e-5, rtol=1e-5)

    # Secondary check: a medium batch that exercises the >=2-step tiled path
    # (2048 < B <= block_b splits into two balanced tiles; partial last tile).
    B2 = 3000
    flat_emb2 = jax.random.normal(jax.random.PRNGKey(1), (B2, F), jnp.float32)
    f1b, f2b = model(None, flat_emb2)
    f1b, f2b = jax.block_until_ready(f1b), jax.block_until_ready(f2b)
    r1b, r2b = model.reference(None, flat_emb2)
    assert jnp.allclose(f1b, r1b, atol=1e-5, rtol=1e-5)
    assert jnp.allclose(f2b, r2b, atol=1e-5, rtol=1e-5)

    print("KERNEL_OK")
</pallas_src>

<mosaic_0001>
module attributes {stable_mosaic.version = 11 : i64} {
  func.func @_feature_selection_kernel(%arg0: i32, %arg1: memref<1x128xf32, #tpu.memory_space<vmem>>, %arg2: memref<1x128xf32, #tpu.memory_space<vmem>>, %arg3: memref<8x128xf32, #tpu.memory_space<vmem>>, %arg4: memref<8x128xf32, #tpu.memory_space<vmem>>, %arg5: memref<8x128xf32, #tpu.memory_space<vmem>>) attributes {dimension_semantics = [#tpu.dimension_semantics<parallel>], iteration_bounds = array<i64: 1>, scalar_prefetch = 0 : i64, scratch_operands = 0 : i64, tpu.core_type = #tpu.core_type<tc>, window_params = [{pipeline_mode = #tpu.pipeline_mode<synchronous>, transform_indices = @transform_0, window_bounds = array<i64: 1, 128>}, {pipeline_mode = #tpu.pipeline_mode<synchronous>, transform_indices = @transform_1, window_bounds = array<i64: 1, 128>}, {transform_indices = @transform_2, window_bounds = array<i64: 8, 128>}, {transform_indices = @transform_3, window_bounds = array<i64: 8, 128>}, {transform_indices = @transform_4, window_bounds = array<i64: 8, 128>}]} {
    %c0 = arith.constant 0 : index
    %c0_0 = arith.constant 0 : index
    %0 = vector.load %arg3[%c0, %c0_0] : memref<8x128xf32, #tpu.memory_space<vmem>>, vector<8x128xf32>
    %c0_1 = arith.constant 0 : index
    %c0_2 = arith.constant 0 : index
    %1 = vector.load %arg1[%c0_1, %c0_2] : memref<1x128xf32, #tpu.memory_space<vmem>>, vector<1x128xf32>
    %2 = vector.broadcast %1 : vector<1x128xf32> to vector<8x128xf32>
    %3 = arith.mulf %0, %2 : vector<8x128xf32>
    %c0_3 = arith.constant 0 : index
    %c0_4 = arith.constant 0 : index
    %4 = vector.load %arg4[%c0_3, %c0_4] : memref<8x128xf32, #tpu.memory_space<vmem>>, vector<8x128xf32>
    tpu.vector_store %arg4[%c0_3, %c0_4], %3 {strides = array<i32>} : memref<8x128xf32, #tpu.memory_space<vmem>>, vector<8x128xf32>,
    %c0_5 = arith.constant 0 : index
    %c0_6 = arith.constant 0 : index
    %5 = vector.load %arg2[%c0_5, %c0_6] : memref<1x128xf32, #tpu.memory_space<vmem>>, vector<1x128xf32>
    %6 = vector.broadcast %5 : vector<1x128xf32> to vector<8x128xf32>
    %7 = arith.mulf %0, %6 : vector<8x128xf32>
    %c0_7 = arith.constant 0 : index
    %c0_8 = arith.constant 0 : index
    %8 = vector.load %arg5[%c0_7, %c0_8] : memref<8x128xf32, #tpu.memory_space<vmem>>, vector<8x128xf32>
    tpu.vector_store %arg5[%c0_7, %c0_8], %7 {strides = array<i32>} : memref<8x128xf32, #tpu.memory_space<vmem>>, vector<8x128xf32>,
    return
  }
  func.func @transform_0(%arg0: i32) -> (i32, i32) {
    %c0_i32 = arith.constant 0 : i32
    %c0_i32_0 = arith.constant 0 : i32
    %c0_i32_1 = arith.constant 0 : i32
    return %c0_i32, %c0_i32_0 : i32, i32
  }
  func.func @transform_1(%arg0: i32) -> (i32, i32) {
    %c0_i32 = arith.constant 0 : i32
    %c0_i32_0 = arith.constant 0 : i32
    %c0_i32_1 = arith.constant 0 : i32
    return %c0_i32, %c0_i32_0 : i32, i32
  }
  func.func @transform_2(%arg0: i32) -> (i32, i32) {
    %c0_i32 = arith.constant 0 : i32
    %c0_i32_0 = arith.constant 0 : i32
    return %arg0, %c0_i32 : i32, i32
  }
  func.func @transform_3(%arg0: i32) -> (i32, i32) {
    %c0_i32 = arith.constant 0 : i32
    %c0_i32_0 = arith.constant 0 : i32
    return %arg0, %c0_i32 : i32, i32
  }
  func.func @transform_4(%arg0: i32) -> (i32, i32) {
    %c0_i32 = arith.constant 0 : i32
    %c0_i32_0 = arith.constant 0 : i32
    return %arg0, %c0_i32 : i32, i32
  }
}

</mosaic_0001>

<bundles_post_ra>
// kernel: tpu_custom_call.1
= control target key start
LH: loop header
LB: loop body
LE: loop exit
PB: predicated region body
PF: predicated region fallthrough
CT: control target
= control target key end

     0   :  { %10 = vsyncpa [#allocation3], 0  ;;  %s229_s0 = inlined_call_operand.hbm [shape: f32[1,128], index: 0, kind: input, shape index: {}]   ;;  %s230_s1 = inlined_call_operand.vmem [shape: f32[1,128], index: 1, kind: input, shape index: {}]   ;;  %s231_s2 = inlined_call_operand.hbm [shape: f32[8,128], index: 2, kind: input, shape index: {}]   ;;  %s232_s3 = inlined_call_operand.hbm [shape: f32[8,128], index: 3, kind: output, shape index: {0}]   ;;  %s233_s4 = inlined_call_operand.hbm [shape: f32[8,128], index: 4, kind: output, shape index: {1}]  }
   0x1   :  { %11 = vsyncpa [#allocation6], 0 }
   0x2   :  { %12 = vsyncpa [#allocation4], 0 }
   0x3   :  { %13 = vsyncpa [#allocation9], 0  ;;  %s185_s15 = smov [#allocation2]   ;;  %s186_s17 = smov [#allocation5]  }
   0x4   :  { %s20_s16 = sshll.u32 %s185_s15, 4  ;;  %s32_s18 = sshll.u32 %s186_s17, 4  ;;  %s21_s16 = int_to_ptr.vmem [resolvable:$true] %s20_s16  ;;  %s33_s18 = int_to_ptr.vmem [resolvable:$true] %s32_s18 }
   0x5   :  { %s105_s19 = scalar_lea.vmem %s21_s16, 16  ;;  %s109_s20 = scalar_lea.vmem %s21_s16, 32 }
   0x6   :  { %p106_p0 = scmp.ne.s32.totalorder %s21_s16, %s105_s19  ;;  %p110_p1 = scmp.lt.s32.totalorder %s21_s16, %s21_s16 }
   0x7   :  { %p111_p2 = scmp.lt.s32.totalorder %s109_s20, %s105_s19 }
   0x9   :  { %p112_p3 = por %p111_p2, %p110_p1 }
   0xb   :  { %p113_p4 = pnand %p112_p3, %p106_p0 }
   0xd   :  { %116 = shalt.err (!%p113_p4)
}
   0xe   :  { %23 = dma.hbm_to_vmem [thread:$0]  %s229_s0, 16, %s21_s16, [#allocation3]  }
   0xf   :  { %s125_s23 = scalar_lea.vmem %s33_s18, 128  ;;  %p130_p6 = scmp.lt.s32.totalorder %s33_s18, %s33_s18 }
  0x10   :  { %p126_p5 = scmp.ne.s32.totalorder %s33_s18, %s125_s23  ;;  %p131_p7 = scmp.lt.s32.totalorder %s125_s23, %s125_s23 }
  0x12   :  { %p132_p8 = por %p131_p7, %p130_p6 }
  0x14   :  { %p133_p9 = pnand %p132_p8, %p126_p5 }
  0x16   :  { %136 = shalt.err (!%p133_p9)
}
  0x17   :  { %35 = dma.hbm_to_vmem [thread:$0]  %s231_s2, 128, %s33_s18, [#allocation6]  }
  0x18   :  { %177 = dma.done.wait [#allocation3], 16  }
  0x19   :  { %178 = vsyncadd [#allocation3], 4294967280 }
  0x1a   :  { %179 = dma.done.wait [#allocation6], 128  }
  0x1b   :  { %180 = vsyncadd [#allocation6], 4294967168  ;;  %s187_s26 = smov [#allocation7]   ;;  %s188_s28 = smov [#allocation8]   ;;  %v42_v0 = vld [vmem:[#allocation5] sm:$0xff] }
  0x1c   :  { %s67_s27 = sshll.u32 %s187_s26, 4  ;;  %s77_s29 = sshll.u32 %s188_s28, 4  ;;  %v91_v1 = vld [vmem:[#allocation2] ss:$0 sm:$0xff]  ;;  %s68_s27 = int_to_ptr.vmem [resolvable:$true] %s67_s27  ;;  %s78_s29 = int_to_ptr.vmem [resolvable:$true] %s77_s29 }
  0x1d   :  { %v92_v2 = vld [vmem:[%s230_s1] ss:$0 sm:$0xff]  ;;  %v50_v3 = vmul.f32 %v91_v1, %v42_v0  ;;  %s137_s2 = scalar_lea.vmem %s68_s27, 128  ;;  %p142_p11 = scmp.lt.s32.totalorder %s68_s27, %s68_s27 }
  0x1e   :  { %v59_v4 = vmul.f32 %v92_v2, %v42_v0  ;;  %p138_p10 = scmp.ne.s32.totalorder %s68_s27, %s137_s2  ;;  %p143_p12 = scmp.lt.s32.totalorder %s137_s2, %s137_s2 }
  0x1f   :  { %51 = vst [vmem:[#allocation7] sm:$0xff] %v50_v3 }
  0x20   :  { %60 = vst [vmem:[#allocation8] sm:$0xff] %v59_v4  ;;  %p144_p13 = por %p143_p12, %p142_p11 }
  0x22   :  { %p145_p0 = pnand %p144_p13, %p138_p10 }
  0x24   :  { %148 = shalt.err (!%p145_p0)
}
  0x25   :  { %70 = dma.vmem_to_hbm [thread:$0]  %s68_s27, 128, %s232_s3, [#allocation4]  }
  0x26   :  { %s157_s7 = scalar_lea.vmem %s78_s29, 128  ;;  %p162_p2 = scmp.lt.s32.totalorder %s78_s29, %s78_s29 }
  0x27   :  { %p158_p1 = scmp.ne.s32.totalorder %s78_s29, %s157_s7  ;;  %p163_p3 = scmp.lt.s32.totalorder %s157_s7, %s157_s7 }
  0x29   :  { %p164_p4 = por %p163_p3, %p162_p2 }
  0x2b   :  { %p165_p5 = pnand %p164_p4, %p158_p1 }
  0x2d   :  { %168 = shalt.err (!%p165_p5)
}
  0x2e   :  { %80 = dma.vmem_to_hbm [thread:$0]  %s78_s29, 128, %s233_s4, [#allocation9]  }
  0x2f   :  { %181 = dma.done.wait [#allocation4], 128  }
  0x30   :  { %182 = vsyncadd [#allocation4], 4294967168 }
  0x31   :  { %183 = dma.done.wait [#allocation9], 128  }
  0x32   :  { %184 = vsyncadd [#allocation9], 4294967168 }
  0x33   :  { %87 = vsyncpa [#allocation3], 1 }
  0x34   :  { %88 = vsyncpa [#allocation6], 1 }
  0x35   :  { %89 = vsyncpa [#allocation4], 1 }
  0x36   :  { %90 = vsyncpa [#allocation9], 1 }

</bundles_post_ra>
